<compile_context>
chip_gen: v6e
topology: v6e:2x2x1
jax: 0.10.0
libtpu: 0.0.40
codegen_flags: <defaults>
</compile_context>

<pallas_src>
import functools

import jax
import jax.numpy as jnp
from jax.experimental import pallas as pl
from jax.experimental.pallas import tpu as pltpu


def _round_up(x: int, m: int) -> int:
    return ((x + m - 1) // m) * m


def _gcn_kernel(adj_ref, h_ref, wt_ref, out_ref, *, apply_relu: bool):
    # First matmul: X @ W^T  ->  (N_pad, F_out_pad), f32 accumulation on MXU.
    xw = jnp.dot(h_ref[...], wt_ref[...], preferred_element_type=jnp.float32)
    # Second matmul: A_rowblock @ (X W^T) -> (TM, F_out_pad).
    # Cast XW back to the bf16 compute dtype so the big matmul runs at bf16
    # MXU rate; accumulation stays f32.
    out = jnp.dot(adj_ref[...], xw.astype(adj_ref.dtype),
                  preferred_element_type=jnp.float32)
    if apply_relu:
        out = jnp.maximum(out, 0.0)
    out_ref[...] = out.astype(out_ref.dtype)


def gcn_layer(hidden, adjacency, weight, *, activation_relu=True,
              block_rows=256, compute_dtype=jnp.bfloat16):
    """Pallas implementation of GraphConvolutionalLayer.forward.

    Args:
      hidden:    (N, F_in)   node features.
      adjacency: (N, N)      (normalized) adjacency matrix.
      weight:    (F_out, F_in)  nn.Linear weight (no bias).
    Returns:
      (new_hidden, adjacency) exactly like the PyTorch module.
    """
    n, f_in = hidden.shape
    f_out = weight.shape[0]
    out_dtype = hidden.dtype

    # --- Padding for lane-dense output + clean row tiling -------------------
    f_out_p = _round_up(f_out, 128)                 # lane-dense output width
    tm = min(block_rows, _round_up(n, 8))           # row tile (multiple of 8)
    n_p = _round_up(n, tm)                          # padded node count
    num_blocks = n_p // tm

    # Zero-padded, bf16 operands (zeros in padding contribute nothing).
    wt = jnp.zeros((f_in, f_out_p), compute_dtype)
    wt = wt.at[:, :f_out].set(weight.T.astype(compute_dtype))
    h_p = jnp.zeros((n_p, f_in), compute_dtype)
    h_p = h_p.at[:n, :].set(hidden.astype(compute_dtype))
    a_p = jnp.zeros((n_p, n_p), compute_dtype)
    a_p = a_p.at[:n, :n].set(adjacency.astype(compute_dtype))

    itm = jnp.dtype(compute_dtype).itemsize
    flops = 2 * n_p * f_in * f_out_p * num_blocks + 2 * n_p * n_p * f_out_p
    bytes_accessed = (a_p.size * itm + h_p.size * itm + wt.size * itm
                      + n_p * f_out_p * jnp.dtype(out_dtype).itemsize)

    kernel = functools.partial(_gcn_kernel, apply_relu=activation_relu)

    out_padded = pl.pallas_call(
        kernel,
        out_shape=jax.ShapeDtypeStruct((n_p, f_out_p), out_dtype),
        grid_spec=pltpu.PrefetchScalarGridSpec(
            num_scalar_prefetch=0,
            grid=(num_blocks,),
            in_specs=[
                # adjacency: row block i, full width (pipelined per step)
                pl.BlockSpec((tm, n_p), lambda i: (i, 0)),
                # hidden: resident (constant index_map -> DMA'd once)
                pl.BlockSpec((n_p, f_in), lambda i: (0, 0)),
                # W^T (lane-padded): resident
                pl.BlockSpec((f_in, f_out_p), lambda i: (0, 0)),
            ],
            out_specs=pl.BlockSpec((tm, f_out_p), lambda i: (i, 0)),
        ),
        compiler_params=pltpu.CompilerParams(
            # Row blocks are independent -> shard across TensorCores on v7x.
            dimension_semantics=("parallel",),
            vmem_limit_bytes=64 * 1024 * 1024,
        ),
        cost_estimate=pl.CostEstimate(
            flops=flops, transcendentals=0, bytes_accessed=bytes_accessed),
    )(a_p, h_p, wt)

    return out_padded[:n, :f_out], adjacency


if __name__ == "__main__":
    # Small, deterministic problem: N=16 nodes, in_features=8, out_features=32.
    # TODO(synk): at this toy size the call is launch/DMA-overhead dominated;
    # real wins come from batching many graphs/layers into one call.
    N, F_IN, F_OUT = 16, 8, 32

    key = jax.random.PRNGKey(0)
    k_h, k_a, k_w = jax.random.split(key, 3)

    hidden = jax.random.normal(k_h, (N, F_IN), dtype=jnp.float32)
    adjacency = jax.random.uniform(k_a, (N, N), dtype=jnp.float32)

    # Deterministic nn.Linear-style init: U(-1/sqrt(F_IN), 1/sqrt(F_IN)),
    # weight shape (out_features, in_features), bias=False.
    bound = 1.0 / (F_IN ** 0.5)
    weight = jax.random.uniform(
        k_w, (F_OUT, F_IN), dtype=jnp.float32, minval=-bound, maxval=bound
    )

    out_hidden, out_adj = gcn_layer(hidden, adjacency, weight, activation_relu=True)
    jax.block_until_ready(out_hidden)
    jax.block_until_ready(out_adj)

    # Reference 1: same bf16-operand / f32-accumulate math as the kernel.
    a_bf = adjacency.astype(jnp.bfloat16)
    h_bf = hidden.astype(jnp.bfloat16)
    wt_bf = weight.T.astype(jnp.bfloat16)
    xw_ref = jnp.dot(h_bf, wt_bf, preferred_element_type=jnp.float32)
    ref_bf16 = jnp.maximum(
        jnp.dot(a_bf, xw_ref.astype(jnp.bfloat16), preferred_element_type=jnp.float32),
        0.0,
    )
    # Reference 2: full-f32 math (loose tolerance; bf16 operand rounding only).
    ref_f32 = jnp.maximum(adjacency @ (hidden @ weight.T), 0.0)

    assert out_hidden.shape == (N, F_OUT)
    assert jnp.allclose(out_hidden, ref_bf16, atol=1e-4, rtol=1e-4)
    assert jnp.allclose(out_hidden, ref_f32, atol=5e-2, rtol=5e-2)
    assert jnp.array_equal(out_adj, adjacency)

    print("KERNEL_OK")
</pallas_src>

<mosaic_0001>
module attributes {stable_mosaic.version = 11 : i64} {
  func.func @_gcn_kernel(%arg0: i32, %arg1: memref<16x16xbf16, #tpu.memory_space<vmem>>, %arg2: memref<16x8xbf16, #tpu.memory_space<vmem>>, %arg3: memref<8x128xbf16, #tpu.memory_space<vmem>>, %arg4: memref<16x128xf32, #tpu.memory_space<vmem>>) attributes {dimension_semantics = [#tpu.dimension_semantics<parallel>], iteration_bounds = array<i64: 1>, scalar_prefetch = 0 : i64, scratch_operands = 0 : i64, tpu.core_type = #tpu.core_type<tc>, window_params = [{transform_indices = @transform_0, window_bounds = array<i64: 16, 16>}, {pipeline_mode = #tpu.pipeline_mode<synchronous>, transform_indices = @transform_1, window_bounds = array<i64: 16, 8>}, {pipeline_mode = #tpu.pipeline_mode<synchronous>, transform_indices = @transform_2, window_bounds = array<i64: 8, 128>}, {transform_indices = @transform_3, window_bounds = array<i64: 16, 128>}]} {
    %c0 = arith.constant 0 : index
    %c0_0 = arith.constant 0 : index
    %0 = vector.load %arg2[%c0, %c0_0] : memref<16x8xbf16, #tpu.memory_space<vmem>>, vector<16x8xbf16>
    %c0_1 = arith.constant 0 : index
    %c0_2 = arith.constant 0 : index
    %1 = vector.load %arg3[%c0_1, %c0_2] : memref<8x128xbf16, #tpu.memory_space<vmem>>, vector<8x128xbf16>
    %cst = arith.constant dense<0.000000e+00> : vector<16x128xf32>
    %2 = tpu.matmul %0, %1, %cst {dimension_numbers = #tpu.dot_dimension_numbers<[1], [0], [0], [1], [0, 0, 1, 1], [], []>} : vector<16x8xbf16>, vector<8x128xbf16>, vector<16x128xf32> -> vector<16x128xf32>
    %c0_3 = arith.constant 0 : index
    %c0_4 = arith.constant 0 : index
    %3 = vector.load %arg1[%c0_3, %c0_4] : memref<16x16xbf16, #tpu.memory_space<vmem>>, vector<16x16xbf16>
    %4 = arith.truncf %2 : vector<16x128xf32> to vector<16x128xbf16>
    %cst_5 = arith.constant dense<0.000000e+00> : vector<16x128xf32>
    %5 = tpu.matmul %3, %4, %cst_5 {dimension_numbers = #tpu.dot_dimension_numbers<[1], [0], [0], [1], [0, 0, 1, 1], [], []>} : vector<16x16xbf16>, vector<16x128xbf16>, vector<16x128xf32> -> vector<16x128xf32>
    %cst_6 = arith.constant 0.000000e+00 : f32
    %6 = vector.broadcast %cst_6 : f32 to vector<16x128xf32>
    %7 = arith.maximumf %5, %6 : vector<16x128xf32>
    %c0_7 = arith.constant 0 : index
    %c0_8 = arith.constant 0 : index
    %8 = vector.load %arg4[%c0_7, %c0_8] : memref<16x128xf32, #tpu.memory_space<vmem>>, vector<16x128xf32>
    tpu.vector_store %arg4[%c0_7, %c0_8], %7 {strides = array<i32>} : memref<16x128xf32, #tpu.memory_space<vmem>>, vector<16x128xf32>,
    return
  }
  func.func @transform_0(%arg0: i32) -> (i32, i32) {
    %c0_i32 = arith.constant 0 : i32
    %c0_i32_0 = arith.constant 0 : i32
    return %arg0, %c0_i32 : i32, i32
  }
  func.func @transform_1(%arg0: i32) -> (i32, i32) {
    %c0_i32 = arith.constant 0 : i32
    %c0_i32_0 = arith.constant 0 : i32
    %c0_i32_1 = arith.constant 0 : i32
    return %c0_i32, %c0_i32_0 : i32, i32
  }
  func.func @transform_2(%arg0: i32) -> (i32, i32) {
    %c0_i32 = arith.constant 0 : i32
    %c0_i32_0 = arith.constant 0 : i32
    %c0_i32_1 = arith.constant 0 : i32
    return %c0_i32, %c0_i32_0 : i32, i32
  }
  func.func @transform_3(%arg0: i32) -> (i32, i32) {
    %c0_i32 = arith.constant 0 : i32
    %c0_i32_0 = arith.constant 0 : i32
    return %arg0, %c0_i32 : i32, i32
  }
}

</mosaic_0001>

<bundles_post_ra>
// kernel: tpu_custom_call.1
= control target key start
LH: loop header
LB: loop body
LE: loop exit
PB: predicated region body
PF: predicated region fallthrough
CT: control target
= control target key end

     0   :  { %vm28_vm0 = vcmask 1043456   ;;  %v195_v2 = vmov 0.0   ;;  %vm196_vm1 = vmmov 0   ;;  %vm24_vm2 = vcmask 64512   ;;  %s232_s0 = inlined_call_operand.vmem [shape: bf16[16,16], index: 0, kind: input, shape index: {}]   ;;  %s233_s1 = inlined_call_operand.vmem [shape: bf16[16,8], index: 1, kind: input, shape index: {}]   ;;  %s234_s2 = inlined_call_operand.vmem [shape: bf16[8,128], index: 2, kind: input, shape index: {}]   ;;  %s235_s3 = inlined_call_operand.hbm [shape: f32[16,128], index: 3, kind: output, shape index: {}]  }
   0x1   :  { %v18_v0 = vld [vmem:[%s234_s2] sm:$0xf]  ;;  %154 = vmatprep.subr.bf16.mxu0 %v195_v2  ;;  %156 = vmatprep.mubr.msk.bf16.mxu0 %vm196_vm1, %v195_v2 }
   0x2   :  { %v171_v1 = vld [vmem:[%s233_s1] sm:$0xff]   ;;  %v30_v3 = vsel %vm28_vm0, %v18_v0, 0  ;;  %160 = vmatprep.subr.bf16.mxu1 %v195_v2 }
   0x3   :  { %155 = vmatpush3.bf16.msra.mxu0 %v30_v3 }
   0x4   :  { %8 = vsyncpa [#allocation3], 0  ;;  %162 = vmatprep.mubr.msk.bf16.mxu1 %vm196_vm1, %v195_v2  ;;  %v172_v9 = vld [vmem:[%s232_s0] sm:$0xff]   ;;  %vm81_vm3 = vcmask 130048   ;;  %s197_s1 = smov [#allocation2]  }
   0x5   :  { %s135_s17 = sshll.u32 %s197_s1, 4  ;;  %s136_s17 = int_to_ptr.vmem [resolvable:$true] %s135_s17 }
   0x6   :  { %157 = vmatmul.mubr.msk.bf16.vlgmr.msra.gmra.mxu0 %vm24_vm2, %v171_v1  ;;  %s173_s18 = scalar_lea.vmem %s136_s17, 256  ;;  %p178_p1 = scmp.lt.s32.totalorder %s136_s17, %s136_s17 }
   0x7   :  { %p174_p0 = scmp.ne.s32.totalorder %s136_s17, %s173_s18  ;;  %p179_p2 = scmp.lt.s32.totalorder %s173_s18, %s173_s18 }
   0x9   :  { %p180_p3 = por %p179_p2, %p178_p1 }
   0xb   :  { %p181_p4 = pnand %p180_p3, %p174_p0 }
  0xc6   :  { %v66_v4 = vpop.f32.mrf.mxu0 }
  0xc8   :  { %v158_v5 = vpop.f32.mrf.mxu0 }
  0xca   :  { %v69_v6 = vpop.f32.mrf.mxu0 }
  0xcb   :  { %v75_v7 = vpack.c.bf16 %v69_v6, %v66_v4 }
  0xcc   :  { %v159_v8 = vpop.f32.mrf.mxu0 }
  0xcd   :  { %161 = vmatpush3.bf16.msra.mxu1 %v75_v7 }
  0xd0   :  { %163 = vmatmul.mubr.msk.bf16.vlgmr.msra.gmra.mxu1 %vm81_vm3, %v172_v9 }
 0x190   :  { %v119_v10 = vpop.f32.mrf.mxu1 }
 0x191   :  { %v126_v11 = vmax.f32 %v119_v10, 0.0 }
 0x192   :  { %v164_v12 = vpop.f32.mrf.mxu1 }
 0x193   :  { %128 = vst [vmem:[#allocation2] sm:$0xff] %v126_v11 }
 0x194   :  { %v122_v13 = vpop.f32.mrf.mxu1 }
 0x195   :  { %v127_v14 = vmax.f32 %v122_v13, 0.0 }
 0x196   :  { %v165_v15 = vpop.f32.mrf.mxu1 }
 0x197   :  { %129 = vst [vmem:[#allocation2 + $0x8] sm:$0xff] %v127_v14 }
 0x198   :  { %184 = shalt.err (!%p181_p4)
}
 0x199   :  { %s198_s0 = smov 128   ;;  %s199_s19 = smov 8  }
 0x19a   :  { %141 = dma.vmem_to_hbm [thread:$0]  %s136_s17, 256, %s235_s3, [#allocation3], %s198_s0, %s198_s0, %s199_s19  }
 0x19b   :  { %193 = dma.done.wait [#allocation3], 256  }
 0x19c   :  { %194 = vsyncadd [#allocation3], 4294967040 }
 0x19d   :  { %145 = vsyncpa [#allocation3], 1 }

</bundles_post_ra>
